<compile_context>
chip_gen: v6e
topology: v6e:2x2x1
jax: 0.10.0
libtpu: 0.0.40
codegen_flags: <defaults>
</compile_context>

<pallas_src>
import jax
import jax.numpy as jnp
import numpy as np
from jax.experimental import pallas as pl
from jax.experimental.pallas import tpu as pltpu


def _round_up(x, m):
    return ((x + m - 1) // m) * m


# ----------------------------------------------------------------------------
# Pallas kernel: one (corner, M-tile, Cout-tile) block of the complex mixing.
#   ar_ref, ai_ref : (Ci, B,  Mt)  spectral activations (real / imag)
#   wr_ref, wi_ref : (Ci, Ct, Mt)  spectral weights     (real / imag)
#   or_ref, oi_ref : (B,  Ct, Mt)  output               (real / imag), float32
# ----------------------------------------------------------------------------
def _spectral_mix_kernel(ar_ref, ai_ref, wr_ref, wi_ref, or_ref, oi_ref):
    ci = ar_ref.shape[0]
    b = ar_ref.shape[1]
    ct = wr_ref.shape[1]
    mt = ar_ref.shape[2]

    def body(i, carry):
        acc_re, acc_im = carry
        # Leading-axis per-iteration loads from the refs (free indexing,
        # bounded live ranges).  Inputs may be bf16; math/accumulate in f32.
        a_re = ar_ref[i].astype(jnp.float32)[:, None, :]   # (B, 1, Mt)
        a_im = ai_ref[i].astype(jnp.float32)[:, None, :]
        w_re = wr_ref[i].astype(jnp.float32)[None, :, :]   # (1, Ct, Mt)
        w_im = wi_ref[i].astype(jnp.float32)[None, :, :]
        acc_re = acc_re + (a_re * w_re - a_im * w_im)
        acc_im = acc_im + (a_re * w_im + a_im * w_re)
        return acc_re, acc_im

    acc_re = jnp.zeros((b, ct, mt), jnp.float32)
    acc_im = jnp.zeros((b, ct, mt), jnp.float32)

    if ci <= 8:
        # Short reduction: static unroll.
        for i in range(ci):
            acc_re, acc_im = body(i, (acc_re, acc_im))
    else:
        # Long reduction: rolled loop (visible to the scheduler) with a modest
        # unroll factor keeps code size and live ranges bounded.
        acc_re, acc_im = jax.lax.fori_loop(0, ci, body, (acc_re, acc_im),
                                           unroll=2)

    or_ref[...] = acc_re
    oi_ref[...] = acc_im


# ----------------------------------------------------------------------------
# Tiling choice: lane tile Mt (multiple of 128, capped by a VMEM budget that is
# safe on v7x's 64 MiB) and out-channel tile Ct (keeps the two f32 accumulators
# roughly vreg-resident).
# ----------------------------------------------------------------------------
_VMEM_TILE_BUDGET = 40 * 1024 * 1024   # double-buffered block budget (v7x-safe)
_ACC_BUDGET = 64 * 1024                # both f32 accumulators together


def _choose_tiles(M, B, Ci, Co, in_itemsize):
    mt = 128
    for cand in (512, 384, 256, 128):
        # double-buffered inputs (a re/im + w re/im) + double-buffered f32 outs
        per_step = 2 * cand * (2 * (Ci * B + Ci * Co) * in_itemsize
                               + 2 * B * Co * 4)
        if per_step <= _VMEM_TILE_BUDGET:
            mt = cand
            break

    mp = _round_up(M, 128)             # lane-dense padding first
    if mp <= mt:
        mt = mp                        # single lane tile
    else:
        mp = _round_up(M, mt)          # pad further so Mt evenly tiles Mp

    ct = Co
    if 2 * B * Co * mt * 4 > _ACC_BUDGET and Co % 8 == 0:
        tgt = max(8, (_ACC_BUDGET // (2 * B * mt * 4)) // 8 * 8)
        c = min(tgt, Co)
        while c >= 8:
            if Co % c == 0:
                ct = c
                break
            c -= 8
    return mp, mt, ct


# ----------------------------------------------------------------------------
# pallas_call wrapper for the mixing of all 4 corners.
#   a_*: (4, Ci, B, M)    w_*: (4, Ci, Co, M)   ->  (4, B, Co, M) float32
# ----------------------------------------------------------------------------
def spectral_mix_pallas(a_re, a_im, w_re, w_im):
    n_corner, Ci, B, M = a_re.shape
    Co = w_re.shape[2]
    in_itemsize = jnp.dtype(a_re.dtype).itemsize

    Mp, Mt, Ct = _choose_tiles(M, B, Ci, Co, in_itemsize)

    if Mp != M:
        # Zero-pad the lane dim: padded lanes of both a and w are zero, so they
        # contribute nothing to the accumulation (and are sliced off below).
        pad = ((0, 0), (0, 0), (0, 0), (0, Mp - M))
        a_re = jnp.pad(a_re, pad)
        a_im = jnp.pad(a_im, pad)
        w_re = jnp.pad(w_re, pad)
        w_im = jnp.pad(w_im, pad)

    n_mt = Mp // Mt
    n_ct = Co // Ct
    grid = (n_corner, n_mt, n_ct)      # Cout-tile innermost -> a-block reuse

    a_spec = pl.BlockSpec((pl.Squeezed(), Ci, B, Mt),
                          lambda k, t, c: (k, 0, 0, t))
    w_spec = pl.BlockSpec((pl.Squeezed(), Ci, Ct, Mt),
                          lambda k, t, c: (k, 0, c, t))
    o_spec = pl.BlockSpec((pl.Squeezed(), B, Ct, Mt),
                          lambda k, t, c: (k, 0, c, t))

    out_re, out_im = pl.pallas_call(
        _spectral_mix_kernel,
        out_shape=(jax.ShapeDtypeStruct((n_corner, B, Co, Mp), jnp.float32),
                   jax.ShapeDtypeStruct((n_corner, B, Co, Mp), jnp.float32)),
        grid_spec=pltpu.PrefetchScalarGridSpec(
            num_scalar_prefetch=0,
            grid=grid,
            in_specs=[a_spec, a_spec, w_spec, w_spec],
            out_specs=[o_spec, o_spec],
        ),
        compiler_params=pltpu.CompilerParams(
            dimension_semantics=("parallel", "parallel", "parallel"),
            vmem_limit_bytes=56 * 1024 * 1024,
        ),
    )(a_re, a_im, w_re, w_im)

    if Mp != M:
        out_re = out_re[..., :M]
        out_im = out_im[..., :M]
    return out_re, out_im


# ----------------------------------------------------------------------------
# Full forward pass (FFT glue in plain JAX, channel mixing in Pallas).
# ----------------------------------------------------------------------------
def spectral_conv3d_fast(x, weights, modes1, modes2, modes3,
                         compute_dtype=jnp.float32):
    """x: (B, Cin, X, Y, T, 2) float32.
    weights: 4 complex64 arrays of shape (Cin, Cout, m1, m2, m3, 2).
    compute_dtype: dtype the spectral operands are fed to the kernel in
        (float32 by default; jnp.bfloat16 is a good choice on v6e/v7x — the
        accumulation stays float32 inside the kernel either way)."""
    w1, w2, w3, w4 = weights
    B, Ci, X, Y, T, _ = x.shape
    Co = w1.shape[1]
    m1, m2, m3 = modes1, modes2, modes3
    Tk = T // 2 + 1
    M = m1 * m2 * m3 * 2

    # TODO(synk): FFT has no Pallas primitive on TPU; rfftn/irfftn stay in XLA.
    x_ft = jnp.fft.rfftn(x, axes=(-4, -3, -2), norm='forward')  # (B,Ci,X,Y,Tk,2)

    corners = (
        x_ft[:, :, :m1, :m2, :m3, :],
        x_ft[:, :, -m1:, :m2, :m3, :],
        x_ft[:, :, :m1, -m2:, :m3, :],
        x_ft[:, :, -m1:, -m2:, :m3, :],
    )

    # Ci-major, flattened-mode layout; real/imag extracted once per corner
    # (no big intermediate complex stack round-tripping through HBM).
    def corner_float(c):
        cf = jnp.transpose(c, (1, 0, 2, 3, 4, 5)).reshape(Ci, B, M)
        return (jnp.real(cf).astype(compute_dtype),
                jnp.imag(cf).astype(compute_dtype))

    a_parts = [corner_float(c) for c in corners]
    a_re = jnp.stack([p[0] for p in a_parts], axis=0)     # (4, Ci, B, M)
    a_im = jnp.stack([p[1] for p in a_parts], axis=0)

    w_flat = jnp.stack([wk.reshape(Ci, Co, M) for wk in (w1, w2, w3, w4)], 0)
    w_re = jnp.real(w_flat).astype(compute_dtype)          # (4, Ci, Co, M)
    w_im = jnp.imag(w_flat).astype(compute_dtype)

    out_re, out_im = spectral_mix_pallas(a_re, a_im, w_re, w_im)

    out_c = (out_re + 1j * out_im).astype(jnp.complex64)
    out_c = out_c.reshape(4, B, Co, m1, m2, m3, 2)

    # TODO(synk): the 4 corner scatters could be fused into the pallas_call via
    # Element index_maps on an out_ft-shaped output; kept as .at[].set for the
    # exact overwrite-on-overlap semantics of the PyTorch module.
    out_ft = jnp.zeros((B, Co, X, Y, Tk, 2), jnp.complex64)
    out_ft = out_ft.at[:, :, :m1, :m2, :m3, :].set(out_c[0])
    out_ft = out_ft.at[:, :, -m1:, :m2, :m3, :].set(out_c[1])
    out_ft = out_ft.at[:, :, :m1, -m2:, :m3, :].set(out_c[2])
    out_ft = out_ft.at[:, :, -m1:, -m2:, :m3, :].set(out_c[3])

    # Explicit output sizes so odd T round-trips to length T (inferred sizes
    # would give 2*(Tk-1) on the last transformed axis).
    x_out = jnp.fft.irfftn(out_ft, s=(X, Y, T), axes=(-4, -3, -2),
                           norm='forward')
    return x_out.astype(jnp.float32)


# ----------------------------------------------------------------------------
# Pure-JAX reference (mirrors the PyTorch forward) for validation.
# ----------------------------------------------------------------------------
def _reference(x, weights, m1, m2, m3):
    w1, w2, w3, w4 = weights
    B, Ci, X, Y, T, _ = x.shape
    Co = w1.shape[1]
    Tk = T // 2 + 1
    x_ft = jnp.fft.rfftn(x, axes=(-4, -3, -2), norm='forward')
    mul = lambda a, w: jnp.einsum('bixytc,ioxytc->boxytc', a, w)
    out_ft = jnp.zeros((B, Co, X, Y, Tk, 2), jnp.complex64)
    out_ft = out_ft.at[:, :, :m1, :m2, :m3, :].set(mul(x_ft[:, :, :m1, :m2, :m3, :], w1))
    out_ft = out_ft.at[:, :, -m1:, :m2, :m3, :].set(mul(x_ft[:, :, -m1:, :m2, :m3, :], w2))
    out_ft = out_ft.at[:, :, :m1, -m2:, :m3, :].set(mul(x_ft[:, :, :m1, -m2:, :m3, :], w3))
    out_ft = out_ft.at[:, :, -m1:, -m2:, :m3, :].set(mul(x_ft[:, :, -m1:, -m2:, :m3, :], w4))
    return jnp.fft.irfftn(out_ft, s=(X, Y, T), axes=(-4, -3, -2),
                          norm='forward').astype(jnp.float32)


def _make_weights(key, Ci, Co, m1, m2, m3):
    scale = 1.0 / (Ci * Co)
    wshape = (Ci, Co, m1, m2, m3, 2)
    ks = jax.random.split(key, 8)
    return tuple(
        (scale * (jax.random.uniform(ks[2 * i], wshape, jnp.float32)
                  + 1j * jax.random.uniform(ks[2 * i + 1], wshape, jnp.float32))
         ).astype(jnp.complex64)
        for i in range(4))


def _run_case(key, B, Ci, Co, X, Y, T, m1, m2, m3, atol=5e-5, rtol=1e-3):
    kx, kw = jax.random.split(key)
    x = jax.random.normal(kx, (B, Ci, X, Y, T, 2), dtype=jnp.float32)
    weights = _make_weights(kw, Ci, Co, m1, m2, m3)
    fwd = jax.jit(lambda xx: spectral_conv3d_fast(xx, weights, m1, m2, m3))
    out = fwd(x)
    jax.block_until_ready(out)
    ref = _reference(x, weights, m1, m2, m3)
    jax.block_until_ready(ref)
    assert out.shape == (B, Co, X, Y, T, 2), out.shape
    np.testing.assert_allclose(np.asarray(out), np.asarray(ref),
                               atol=atol, rtol=rtol)


if __name__ == "__main__":
    key = jax.random.PRNGKey(0)
    k1, k2, k3 = jax.random.split(key, 3)

    # Small shapes consistent with the module (main check).
    _run_case(k1, B=2, Ci=4, Co=4, X=16, Y=16, T=8, m1=4, m2=4, m3=3)

    # Larger channel / mode counts: exercises M tiling, Cout tiling and the
    # rolled (fori_loop) Ci reduction path.
    _run_case(k2, B=2, Ci=16, Co=16, X=16, Y=16, T=16, m1=8, m2=8, m3=8)

    # Odd T: checks the explicit-size inverse FFT.
    _run_case(k3, B=1, Ci=2, Co=4, X=8, Y=8, T=9, m1=2, m2=2, m3=3)

    print("KERNEL_OK")
</pallas_src>

<mosaic_0001>
module attributes {stable_mosaic.version = 11 : i64} {
  func.func @_spectral_mix_kernel(%arg0: i32, %arg1: i32, %arg2: i32, %arg3: memref<1x4x2x128xf32, #tpu.memory_space<vmem>>, %arg4: memref<1x4x2x128xf32, #tpu.memory_space<vmem>>, %arg5: memref<1x4x4x128xf32, #tpu.memory_space<vmem>>, %arg6: memref<1x4x4x128xf32, #tpu.memory_space<vmem>>, %arg7: memref<1x2x4x128xf32, #tpu.memory_space<vmem>>, %arg8: memref<1x2x4x128xf32, #tpu.memory_space<vmem>>) attributes {dimension_semantics = [#tpu.dimension_semantics<parallel>, #tpu.dimension_semantics<parallel>, #tpu.dimension_semantics<parallel>], iteration_bounds = array<i64: 4, 1, 1>, scalar_prefetch = 0 : i64, scratch_operands = 0 : i64, tpu.core_type = #tpu.core_type<tc>, window_params = [{transform_indices = @transform_0, window_bounds = array<i64: 1, 4, 2, 128>}, {transform_indices = @transform_1, window_bounds = array<i64: 1, 4, 2, 128>}, {transform_indices = @transform_2, window_bounds = array<i64: 1, 4, 4, 128>}, {transform_indices = @transform_3, window_bounds = array<i64: 1, 4, 4, 128>}, {transform_indices = @transform_4, window_bounds = array<i64: 1, 2, 4, 128>}, {transform_indices = @transform_5, window_bounds = array<i64: 1, 2, 4, 128>}]} {
    %cst = arith.constant 0.000000e+00 : f32
    %0 = vector.broadcast %cst : f32 to vector<2x4x128xf32>
    %cst_0 = arith.constant 0.000000e+00 : f32
    %1 = vector.broadcast %cst_0 : f32 to vector<2x4x128xf32>
    %c0 = arith.constant 0 : index
    %c0_1 = arith.constant 0 : index
    %c0_2 = arith.constant 0 : index
    %c0_3 = arith.constant 0 : index
    %2 = vector.load %arg3[%c0, %c0_1, %c0_2, %c0_3] : memref<1x4x2x128xf32, #tpu.memory_space<vmem>>, vector<1x1x2x128xf32>
    %3 = vector.shape_cast %2 : vector<1x1x2x128xf32> to vector<2x128xf32>
    %4 = vector.shape_cast %3 : vector<2x128xf32> to vector<2x1x128xf32>
    %c0_4 = arith.constant 0 : index
    %c0_5 = arith.constant 0 : index
    %c0_6 = arith.constant 0 : index
    %c0_7 = arith.constant 0 : index
    %5 = vector.load %arg4[%c0_4, %c0_5, %c0_6, %c0_7] : memref<1x4x2x128xf32, #tpu.memory_space<vmem>>, vector<1x1x2x128xf32>
    %6 = vector.shape_cast %5 : vector<1x1x2x128xf32> to vector<2x128xf32>
    %7 = vector.shape_cast %6 : vector<2x128xf32> to vector<2x1x128xf32>
    %c0_8 = arith.constant 0 : index
    %c0_9 = arith.constant 0 : index
    %c0_10 = arith.constant 0 : index
    %c0_11 = arith.constant 0 : index
    %8 = vector.load %arg5[%c0_8, %c0_9, %c0_10, %c0_11] : memref<1x4x4x128xf32, #tpu.memory_space<vmem>>, vector<1x1x4x128xf32>
    %9 = vector.shape_cast %8 : vector<1x1x4x128xf32> to vector<4x128xf32>
    %10 = vector.shape_cast %9 : vector<4x128xf32> to vector<1x4x128xf32>
    %c0_12 = arith.constant 0 : index
    %c0_13 = arith.constant 0 : index
    %c0_14 = arith.constant 0 : index
    %c0_15 = arith.constant 0 : index
    %11 = vector.load %arg6[%c0_12, %c0_13, %c0_14, %c0_15] : memref<1x4x4x128xf32, #tpu.memory_space<vmem>>, vector<1x1x4x128xf32>
    %12 = vector.shape_cast %11 : vector<1x1x4x128xf32> to vector<4x128xf32>
    %13 = vector.shape_cast %12 : vector<4x128xf32> to vector<1x4x128xf32>
    %14 = vector.broadcast %4 : vector<2x1x128xf32> to vector<2x4x128xf32>
    %15 = vector.broadcast %10 : vector<1x4x128xf32> to vector<2x4x128xf32>
    %16 = arith.mulf %14, %15 : vector<2x4x128xf32>
    %17 = vector.broadcast %7 : vector<2x1x128xf32> to vector<2x4x128xf32>
    %18 = vector.broadcast %13 : vector<1x4x128xf32> to vector<2x4x128xf32>
    %19 = arith.mulf %17, %18 : vector<2x4x128xf32>
    %20 = arith.subf %16, %19 : vector<2x4x128xf32>
    %21 = arith.addf %0, %20 : vector<2x4x128xf32>
    %22 = vector.broadcast %4 : vector<2x1x128xf32> to vector<2x4x128xf32>
    %23 = vector.broadcast %13 : vector<1x4x128xf32> to vector<2x4x128xf32>
    %24 = arith.mulf %22, %23 : vector<2x4x128xf32>
    %25 = vector.broadcast %7 : vector<2x1x128xf32> to vector<2x4x128xf32>
    %26 = vector.broadcast %10 : vector<1x4x128xf32> to vector<2x4x128xf32>
    %27 = arith.mulf %25, %26 : vector<2x4x128xf32>
    %28 = arith.addf %24, %27 : vector<2x4x128xf32>
    %29 = arith.addf %1, %28 : vector<2x4x128xf32>
    %c0_16 = arith.constant 0 : index
    %c1 = arith.constant 1 : index
    %c0_17 = arith.constant 0 : index
    %c0_18 = arith.constant 0 : index
    %30 = vector.load %arg3[%c0_16, %c1, %c0_17, %c0_18] : memref<1x4x2x128xf32, #tpu.memory_space<vmem>>, vector<1x1x2x128xf32>
    %31 = vector.shape_cast %30 : vector<1x1x2x128xf32> to vector<2x128xf32>
    %32 = vector.shape_cast %31 : vector<2x128xf32> to vector<2x1x128xf32>
    %c0_19 = arith.constant 0 : index
    %c1_20 = arith.constant 1 : index
    %c0_21 = arith.constant 0 : index
    %c0_22 = arith.constant 0 : index
    %33 = vector.load %arg4[%c0_19, %c1_20, %c0_21, %c0_22] : memref<1x4x2x128xf32, #tpu.memory_space<vmem>>, vector<1x1x2x128xf32>
    %34 = vector.shape_cast %33 : vector<1x1x2x128xf32> to vector<2x128xf32>
    %35 = vector.shape_cast %34 : vector<2x128xf32> to vector<2x1x128xf32>
    %c0_23 = arith.constant 0 : index
    %c1_24 = arith.constant 1 : index
    %c0_25 = arith.constant 0 : index
    %c0_26 = arith.constant 0 : index
    %36 = vector.load %arg5[%c0_23, %c1_24, %c0_25, %c0_26] : memref<1x4x4x128xf32, #tpu.memory_space<vmem>>, vector<1x1x4x128xf32>
    %37 = vector.shape_cast %36 : vector<1x1x4x128xf32> to vector<4x128xf32>
    %38 = vector.shape_cast %37 : vector<4x128xf32> to vector<1x4x128xf32>
    %c0_27 = arith.constant 0 : index
    %c1_28 = arith.constant 1 : index
    %c0_29 = arith.constant 0 : index
    %c0_30 = arith.constant 0 : index
    %39 = vector.load %arg6[%c0_27, %c1_28, %c0_29, %c0_30] : memref<1x4x4x128xf32, #tpu.memory_space<vmem>>, vector<1x1x4x128xf32>
    %40 = vector.shape_cast %39 : vector<1x1x4x128xf32> to vector<4x128xf32>
    %41 = vector.shape_cast %40 : vector<4x128xf32> to vector<1x4x128xf32>
    %42 = vector.broadcast %32 : vector<2x1x128xf32> to vector<2x4x128xf32>
    %43 = vector.broadcast %38 : vector<1x4x128xf32> to vector<2x4x128xf32>
    %44 = arith.mulf %42, %43 : vector<2x4x128xf32>
    %45 = vector.broadcast %35 : vector<2x1x128xf32> to vector<2x4x128xf32>
    %46 = vector.broadcast %41 : vector<1x4x128xf32> to vector<2x4x128xf32>
    %47 = arith.mulf %45, %46 : vector<2x4x128xf32>
    %48 = arith.subf %44, %47 : vector<2x4x128xf32>
    %49 = arith.addf %21, %48 : vector<2x4x128xf32>
    %50 = vector.broadcast %32 : vector<2x1x128xf32> to vector<2x4x128xf32>
    %51 = vector.broadcast %41 : vector<1x4x128xf32> to vector<2x4x128xf32>
    %52 = arith.mulf %50, %51 : vector<2x4x128xf32>
    %53 = vector.broadcast %35 : vector<2x1x128xf32> to vector<2x4x128xf32>
    %54 = vector.broadcast %38 : vector<1x4x128xf32> to vector<2x4x128xf32>
    %55 = arith.mulf %53, %54 : vector<2x4x128xf32>
    %56 = arith.addf %52, %55 : vector<2x4x128xf32>
    %57 = arith.addf %29, %56 : vector<2x4x128xf32>
    %c0_31 = arith.constant 0 : index
    %c2 = arith.constant 2 : index
    %c0_32 = arith.constant 0 : index
    %c0_33 = arith.constant 0 : index
    %58 = vector.load %arg3[%c0_31, %c2, %c0_32, %c0_33] : memref<1x4x2x128xf32, #tpu.memory_space<vmem>>, vector<1x1x2x128xf32>
    %59 = vector.shape_cast %58 : vector<1x1x2x128xf32> to vector<2x128xf32>
    %60 = vector.shape_cast %59 : vector<2x128xf32> to vector<2x1x128xf32>
    %c0_34 = arith.constant 0 : index
    %c2_35 = arith.constant 2 : index
    %c0_36 = arith.constant 0 : index
    %c0_37 = arith.constant 0 : index
    %61 = vector.load %arg4[%c0_34, %c2_35, %c0_36, %c0_37] : memref<1x4x2x128xf32, #tpu.memory_space<vmem>>, vector<1x1x2x128xf32>
    %62 = vector.shape_cast %61 : vector<1x1x2x128xf32> to vector<2x128xf32>
    %63 = vector.shape_cast %62 : vector<2x128xf32> to vector<2x1x128xf32>
    %c0_38 = arith.constant 0 : index
    %c2_39 = arith.constant 2 : index
    %c0_40 = arith.constant 0 : index
    %c0_41 = arith.constant 0 : index
    %64 = vector.load %arg5[%c0_38, %c2_39, %c0_40, %c0_41] : memref<1x4x4x128xf32, #tpu.memory_space<vmem>>, vector<1x1x4x128xf32>
    %65 = vector.shape_cast %64 : vector<1x1x4x128xf32> to vector<4x128xf32>
    %66 = vector.shape_cast %65 : vector<4x128xf32> to vector<1x4x128xf32>
    %c0_42 = arith.constant 0 : index
    %c2_43 = arith.constant 2 : index
    %c0_44 = arith.constant 0 : index
    %c0_45 = arith.constant 0 : index
    %67 = vector.load %arg6[%c0_42, %c2_43, %c0_44, %c0_45] : memref<1x4x4x128xf32, #tpu.memory_space<vmem>>, vector<1x1x4x128xf32>
    %68 = vector.shape_cast %67 : vector<1x1x4x128xf32> to vector<4x128xf32>
    %69 = vector.shape_cast %68 : vector<4x128xf32> to vector<1x4x128xf32>
    %70 = vector.broadcast %60 : vector<2x1x128xf32> to vector<2x4x128xf32>
    %71 = vector.broadcast %66 : vector<1x4x128xf32> to vector<2x4x128xf32>
    %72 = arith.mulf %70, %71 : vector<2x4x128xf32>
    %73 = vector.broadcast %63 : vector<2x1x128xf32> to vector<2x4x128xf32>
    %74 = vector.broadcast %69 : vector<1x4x128xf32> to vector<2x4x128xf32>
    %75 = arith.mulf %73, %74 : vector<2x4x128xf32>
    %76 = arith.subf %72, %75 : vector<2x4x128xf32>
    %77 = arith.addf %49, %76 : vector<2x4x128xf32>
    %78 = vector.broadcast %60 : vector<2x1x128xf32> to vector<2x4x128xf32>
    %79 = vector.broadcast %69 : vector<1x4x128xf32> to vector<2x4x128xf32>
    %80 = arith.mulf %78, %79 : vector<2x4x128xf32>
    %81 = vector.broadcast %63 : vector<2x1x128xf32> to vector<2x4x128xf32>
    %82 = vector.broadcast %66 : vector<1x4x128xf32> to vector<2x4x128xf32>
    %83 = arith.mulf %81, %82 : vector<2x4x128xf32>
    %84 = arith.addf %80, %83 : vector<2x4x128xf32>
    %85 = arith.addf %57, %84 : vector<2x4x128xf32>
    %c0_46 = arith.constant 0 : index
    %c3 = arith.constant 3 : index
    %c0_47 = arith.constant 0 : index
    %c0_48 = arith.constant 0 : index
    %86 = vector.load %arg3[%c0_46, %c3, %c0_47, %c0_48] : memref<1x4x2x128xf32, #tpu.memory_space<vmem>>, vector<1x1x2x128xf32>
    %87 = vector.shape_cast %86 : vector<1x1x2x128xf32> to vector<2x128xf32>
    %88 = vector.shape_cast %87 : vector<2x128xf32> to vector<2x1x128xf32>
    %c0_49 = arith.constant 0 : index
    %c3_50 = arith.constant 3 : index
    %c0_51 = arith.constant 0 : index
    %c0_52 = arith.constant 0 : index
    %89 = vector.load %arg4[%c0_49, %c3_50, %c0_51, %c0_52] : memref<1x4x2x128xf32, #tpu.memory_space<vmem>>, vector<1x1x2x128xf32>
    %90 = vector.shape_cast %89 : vector<1x1x2x128xf32> to vector<2x128xf32>
    %91 = vector.shape_cast %90 : vector<2x128xf32> to vector<2x1x128xf32>
    %c0_53 = arith.constant 0 : index
    %c3_54 = arith.constant 3 : index
    %c0_55 = arith.constant 0 : index
    %c0_56 = arith.constant 0 : index
    %92 = vector.load %arg5[%c0_53, %c3_54, %c0_55, %c0_56] : memref<1x4x4x128xf32, #tpu.memory_space<vmem>>, vector<1x1x4x128xf32>
    %93 = vector.shape_cast %92 : vector<1x1x4x128xf32> to vector<4x128xf32>
    %94 = vector.shape_cast %93 : vector<4x128xf32> to vector<1x4x128xf32>
    %c0_57 = arith.constant 0 : index
    %c3_58 = arith.constant 3 : index
    %c0_59 = arith.constant 0 : index
    %c0_60 = arith.constant 0 : index
    %95 = vector.load %arg6[%c0_57, %c3_58, %c0_59, %c0_60] : memref<1x4x4x128xf32, #tpu.memory_space<vmem>>, vector<1x1x4x128xf32>
    %96 = vector.shape_cast %95 : vector<1x1x4x128xf32> to vector<4x128xf32>
    %97 = vector.shape_cast %96 : vector<4x128xf32> to vector<1x4x128xf32>
    %98 = vector.broadcast %88 : vector<2x1x128xf32> to vector<2x4x128xf32>
    %99 = vector.broadcast %94 : vector<1x4x128xf32> to vector<2x4x128xf32>
    %100 = arith.mulf %98, %99 : vector<2x4x128xf32>
    %101 = vector.broadcast %91 : vector<2x1x128xf32> to vector<2x4x128xf32>
    %102 = vector.broadcast %97 : vector<1x4x128xf32> to vector<2x4x128xf32>
    %103 = arith.mulf %101, %102 : vector<2x4x128xf32>
    %104 = arith.subf %100, %103 : vector<2x4x128xf32>
    %105 = arith.addf %77, %104 : vector<2x4x128xf32>
    %106 = vector.broadcast %88 : vector<2x1x128xf32> to vector<2x4x128xf32>
    %107 = vector.broadcast %97 : vector<1x4x128xf32> to vector<2x4x128xf32>
    %108 = arith.mulf %106, %107 : vector<2x4x128xf32>
    %109 = vector.broadcast %91 : vector<2x1x128xf32> to vector<2x4x128xf32>
    %110 = vector.broadcast %94 : vector<1x4x128xf32> to vector<2x4x128xf32>
    %111 = arith.mulf %109, %110 : vector<2x4x128xf32>
    %112 = arith.addf %108, %111 : vector<2x4x128xf32>
    %113 = arith.addf %85, %112 : vector<2x4x128xf32>
    %c0_61 = arith.constant 0 : index
    %c0_62 = arith.constant 0 : index
    %c0_63 = arith.constant 0 : index
    %c0_64 = arith.constant 0 : index
    %114 = vector.load %arg7[%c0_61, %c0_62, %c0_63, %c0_64] : memref<1x2x4x128xf32, #tpu.memory_space<vmem>>, vector<1x2x4x128xf32>
    %115 = vector.shape_cast %114 : vector<1x2x4x128xf32> to vector<2x4x128xf32>
    %116 = vector.shape_cast %105 : vector<2x4x128xf32> to vector<1x2x4x128xf32>
    tpu.vector_store %arg7[%c0_61, %c0_62, %c0_63, %c0_64], %116 {strides = array<i32>} : memref<1x2x4x128xf32, #tpu.memory_space<vmem>>, vector<1x2x4x128xf32>,
    %c0_65 = arith.constant 0 : index
    %c0_66 = arith.constant 0 : index
    %c0_67 = arith.constant 0 : index
    %c0_68 = arith.constant 0 : index
    %117 = vector.load %arg8[%c0_65, %c0_66, %c0_67, %c0_68] : memref<1x2x4x128xf32, #tpu.memory_space<vmem>>, vector<1x2x4x128xf32>
    %118 = vector.shape_cast %117 : vector<1x2x4x128xf32> to vector<2x4x128xf32>
    %119 = vector.shape_cast %113 : vector<2x4x128xf32> to vector<1x2x4x128xf32>
    tpu.vector_store %arg8[%c0_65, %c0_66, %c0_67, %c0_68], %119 {strides = array<i32>} : memref<1x2x4x128xf32, #tpu.memory_space<vmem>>, vector<1x2x4x128xf32>,
    return
  }
  func.func @transform_0(%arg0: i32, %arg1: i32, %arg2: i32) -> (i32, i32, i32, i32) {
    %c0_i32 = arith.constant 0 : i32
    %c0_i32_0 = arith.constant 0 : i32
    %c0_i32_1 = arith.constant 0 : i32
    return %arg0, %c0_i32, %c0_i32_0, %arg1 : i32, i32, i32, i32
  }
  func.func @transform_1(%arg0: i32, %arg1: i32, %arg2: i32) -> (i32, i32, i32, i32) {
    %c0_i32 = arith.constant 0 : i32
    %c0_i32_0 = arith.constant 0 : i32
    %c0_i32_1 = arith.constant 0 : i32
    return %arg0, %c0_i32, %c0_i32_0, %arg1 : i32, i32, i32, i32
  }
  func.func @transform_2(%arg0: i32, %arg1: i32, %arg2: i32) -> (i32, i32, i32, i32) {
    %c0_i32 = arith.constant 0 : i32
    %c0_i32_0 = arith.constant 0 : i32
    return %arg0, %c0_i32, %arg2, %arg1 : i32, i32, i32, i32
  }
  func.func @transform_3(%arg0: i32, %arg1: i32, %arg2: i32) -> (i32, i32, i32, i32) {
    %c0_i32 = arith.constant 0 : i32
    %c0_i32_0 = arith.constant 0 : i32
    return %arg0, %c0_i32, %arg2, %arg1 : i32, i32, i32, i32
  }
  func.func @transform_4(%arg0: i32, %arg1: i32, %arg2: i32) -> (i32, i32, i32, i32) {
    %c0_i32 = arith.constant 0 : i32
    %c0_i32_0 = arith.constant 0 : i32
    return %arg0, %c0_i32, %arg2, %arg1 : i32, i32, i32, i32
  }
  func.func @transform_5(%arg0: i32, %arg1: i32, %arg2: i32) -> (i32, i32, i32, i32) {
    %c0_i32 = arith.constant 0 : i32
    %c0_i32_0 = arith.constant 0 : i32
    return %arg0, %c0_i32, %arg2, %arg1 : i32, i32, i32, i32
  }
}

</mosaic_0001>

<bundles_post_ra>
// kernel: _lambda_.1
= control target key start
LH: loop header
LB: loop body
LE: loop exit
PB: predicated region body
PF: predicated region fallthrough
CT: control target
= control target key end

     0   :  { %s1113_s18 = smov 0   ;;  %s1115_s19 = smov 0   ;;  %s1288_s0 = inlined_call_operand.vmem [shape: f32[4,4,2,128], index: 0, kind: input, shape index: {}]   ;;  %s1289_s1 = inlined_call_operand.vmem [shape: f32[4,4,2,128], index: 1, kind: input, shape index: {}]   ;;  %s1290_s2 = inlined_call_operand.vmem [shape: f32[4,4,4,128], index: 2, kind: input, shape index: {}]   ;;  %s1291_s3 = inlined_call_operand.vmem [shape: f32[4,4,4,128], index: 3, kind: input, shape index: {}]   ;;  %s1292_s4 = inlined_call_operand.vmem [shape: f32[4,2,4,128], index: 4, kind: output, shape index: {0}]   ;;  %s1293_s5 = inlined_call_operand.vmem [shape: f32[4,2,4,128], index: 5, kind: output, shape index: {1}]  }
   0x1   :  { %s1117_s20 = smov 0  }
   0x2 LB: > { %s35_s21 = sadd.s32 1, %s1076_s19  ;;  %p992_p0 = scmp.ge.s32.totalorder %s1080_s20, 1  ;;  %s1080_s20 = sphi %s1117_s20, %s16_s20   ;;  %s1076_s19 = sphi %s1115_s19, %s1295_s19   ;;  %s1072_s18 = sphi %s1113_s18, %s1294_s18  }
   0x3   : > { %p37_p1 = scmp.ge.s32.totalorder %s35_s21, 4  ;;  %p277_p2 = scmp.lt.s32.totalorder %s1080_s20, 5 }
   0x5   : > { %s1297_s21 = smov (%p37_p1, %s35_s21), 0  ;;  %p278_p3 = pnand %p992_p0, %p277_p2 }
   0x6   : > { %p355_p4 = scmp.lt.s32.totalorder (!%p278_p3), %s1072_s18, 3 }
   0x7   : > { %281 = sbr.rel (%p278_p3) target bundleno = 50 (0x32), region = 36 }
   0xc   : > { %v428_v0 = vlaneseq  ;;  %v1082_v1 = vmov 1966171168   ;;  %s1299_s18 = smov (!%p355_p4, %s1072_s18), 3 }
   0xd   : > { %v426_v2 = vunpack.c.l.s4 %v1082_v1  ;;  %s1131_s22 = sshll.u32 %s1299_s18, 3  ;;  %s1029_s23 = sshll.u32 %s1299_s18, 4 }
   0xe   : > { %v429_v3 = vshrl.u32 %v428_v0, 7  ;;  %s1137_s26 = scalar_lea.vmem %s1288_s0, %s1131_s22  ;;  %s1143_s29 = scalar_lea.vmem %s1289_s1, %s1131_s22 }
   0xf   : > { %v427_v4 = vunpack.c.0.s8 %v426_v2  ;;  %s1152_s7 = scalar_lea.vmem %s1290_s2, %s1029_s23  ;;  %s1157_s10 = scalar_lea.vmem %s1291_s3, %s1029_s23  ;;  %v1005_v7 = vld.sshfl [vmem:[%s1137_s26] sm:$0x11 pattern:$0x75316420] }
  0x10   : > { %v1147_v6 = vsub.s32 0, %v429_v3  ;;  %v424_v8 = vcombine.high %v1005_v7, %v1005_v7  ;;  %v1006_v10 = vld.sshfl [vmem:[%s1143_s29] sm:$0x11 pattern:$0x75316420]  ;;  %s1241_s13 = scalar_lea.vmem %s1292_s4, %s1131_s22  ;;  %s414_s16 = scalar_lea.vmem %s1293_s5, %s1131_s22 }
  0x11   : > { %v1145_v5 = vsub.s32 %v427_v4, %v429_v3  ;;  %v448_v11 = vcombine.high %v1006_v10, %v1006_v10  ;;  %v1164_v13 = vld [vmem:[%s1152_s7] sm:$0xf]  ;;  %v1179_v24 = vld [vmem:[%s1152_s7 + $0x4] sm:$0xf]  ;;  %v1198_v36 = vld [vmem:[%s1152_s7 + $0x8] sm:$0xf] }
  0x12   : > { %v1008_v14 = vld.sshfl [vmem:[%s1137_s26 + $0x2] sm:$0x11 pattern:$0x75316420]  ;;  %v1186_v28 = vld [vmem:[%s1157_s10 + $0x4] sm:$0xf] }
  0x13   : > { %v431_v9 = vrot.slane %v1005_v7, %v1145_v5  ;;  %v455_v12 = vrot.slane %v1006_v10, %v1145_v5  ;;  %v1168_v15 = vld [vmem:[%s1157_s10] sm:$0xf]  ;;  %v511_v17 = vcombine.high %v1008_v14, %v1008_v14  ;;  %v518_v18 = vrot.slane %v1008_v14, %v1145_v5  ;;  %v1014_v25 = vld.sshfl [vmem:[%s1137_s26 + $0x4] sm:$0x11 pattern:$0x75316420] }
  0x14   : > { %v1010_v19 = vld.sshfl [vmem:[%s1143_s29 + $0x2] sm:$0x11 pattern:$0x75316420]  ;;  %v438_v20 = vrot.slane %v424_v8, %v1145_v5  ;;  %v462_v26 = vrot.slane %v448_v11, %v1145_v5  ;;  %v608_v30 = vrot.slane %v1014_v25, %v1145_v5  ;;  %v1206_v40 = vld [vmem:[%s1157_s10 + $0x8] sm:$0xf]  ;;  %v601_v62 = vcombine.high %v1014_v25, %v1014_v25 }
  0x15   : > { %v1171_v16 = vrot.slane %v431_v9, %v1147_v6  ;;  %v480_v21 = vrot.slane %v455_v12, %v1147_v6  ;;  %v536_v22 = vcombine.high %v1010_v19, %v1010_v19  ;;  %v543_v23 = vrot.slane %v1010_v19, %v1145_v5  ;;  %v1016_v31 = vld.sshfl [vmem:[%s1143_s29 + $0x4] sm:$0x11 pattern:$0x75316420]  ;;  %v1217_v49 = vld [vmem:[%s1152_s7 + $0xc] sm:$0xf] }
  0x16   : > { %v558_v29 = vrot.slane %v518_v18, %v1147_v6  ;;  %v1192_v32 = vrot.slane %v438_v20, %v1147_v6  ;;  %v633_v35 = vrot.slane %v1016_v31, %v1145_v5  ;;  %v1020_v37 = vld.sshfl [vmem:[%s1137_s26 + $0x6] sm:$0x11 pattern:$0x75316420]  ;;  %v1202_v38 = vrot.slane %v462_v26, %v1147_v6  ;;  %v1221_v51 = vld [vmem:[%s1157_s10 + $0xc] sm:$0xf] }
  0x17   : > { %v475_v27 = vmul.f32 %v1171_v16, %v1164_v13  ;;  %v487_v33 = vmul.f32 %v480_v21, %v1168_v15  ;;  %v570_v34 = vrot.slane %v543_v23, %v1147_v6  ;;  %v648_v41 = vrot.slane %v608_v30, %v1147_v6  ;;  %v1022_v43 = vld.sshfl [vmem:[%s1143_s29 + $0x6] sm:$0x11 pattern:$0x75316420] }
  0x18   : > { %v565_v39 = vmul.f32 %v1179_v24, %v558_v29  ;;  %v698_v42 = vrot.slane %v1020_v37, %v1145_v5  ;;  %v476_v44 = vmul.f32 %v1192_v32, %v1164_v13  ;;  %v660_v47 = vrot.slane %v633_v35, %v1147_v6 }
  0x19   : > { %v489_v45 = vsub.f32 %v475_v27, %v487_v33  ;;  %v577_v46 = vmul.f32 %v1186_v28, %v570_v34  ;;  %v723_v48 = vrot.slane %v1022_v43, %v1145_v5  ;;  %v655_v50 = vmul.f32 %v1198_v36, %v648_v41 }
  0x1a   : > { %v738_v52 = vrot.slane %v698_v42, %v1147_v6  ;;  %v488_v53 = vmul.f32 %v1202_v38, %v1168_v15  ;;  %v525_v54 = vrot.slane %v511_v17, %v1145_v5  ;;  %v667_v56 = vmul.f32 %v1206_v40, %v660_v47 }
  0x1b   : > { %v579_v55 = vsub.f32 %v565_v39, %v577_v46  ;;  %v750_v57 = vrot.slane %v723_v48, %v1147_v6  ;;  %v550_v58 = vrot.slane %v536_v22, %v1145_v5  ;;  %v615_v4 = vrot.slane %v601_v62, %v1145_v5 }
  0x1c   : > { %v745_v59 = vmul.f32 %v1217_v49, %v738_v52  ;;  %v490_v60 = vsub.f32 %v476_v44, %v488_v53  ;;  %v562_v61 = vrot.slane %v525_v54, %v1147_v6  ;;  %v669_v0 = vsub.f32 %v655_v50, %v667_v56 }
  0x1d   : > { %v581_v63 = vadd.f32 %v579_v55, %v489_v45  ;;  %v757_v1 = vmul.f32 %v1221_v51, %v750_v57  ;;  %v574_v2 = vrot.slane %v550_v58, %v1147_v6  ;;  %v626_v7 = vcombine.high %v1016_v31, %v1016_v31 }
  0x1e   : > { %v566_v3 = vmul.f32 %v1179_v24, %v562_v61  ;;  %v691_v8 = vcombine.high %v1020_v37, %v1020_v37  ;;  %v716_v12 = vcombine.high %v1022_v43, %v1022_v43  ;;  %v652_v17 = vrot.slane %v615_v4, %v1147_v6 }
  0x1f   : > { %v671_v9 = vadd.f32 %v669_v0, %v581_v63  ;;  %v759_v10 = vsub.f32 %v745_v59, %v757_v1  ;;  %v578_v11 = vmul.f32 %v1186_v28, %v574_v2  ;;  %v640_v14 = vrot.slane %v626_v7, %v1145_v5 }
  0x20   : > { %v705_v18 = vrot.slane %v691_v8, %v1145_v5  ;;  %v493_v19 = vmul.f32 %v1171_v16, %v1168_v15  ;;  %v730_v23 = vrot.slane %v716_v12, %v1145_v5  ;;  %v495_v25 = vmul.f32 %v480_v21, %v1164_v13 }
  0x21   : > { %v761_v20 = vadd.f32 %v759_v10, %v671_v9  ;;  %v580_v22 = vsub.f32 %v566_v3, %v578_v11  ;;  %v656_v26 = vmul.f32 %v1198_v36, %v652_v17  ;;  %v664_v27 = vrot.slane %v640_v14, %v1147_v6 }
  0x22   : > { %v742_v30 = vrot.slane %v705_v18, %v1147_v6  ;;  %v583_v31 = vmul.f32 %v1186_v28, %v558_v29  ;;  %v754_v35 = vrot.slane %v730_v23, %v1147_v6  ;;  %v497_v37 = vadd.f32 %v495_v25, %v493_v19 }
  0x23   : > { %771 = vst [vmem:[%s1241_s13] sm:$0xf] %v761_v20  ;;  %v582_v33 = vadd.f32 %v580_v22, %v490_v60  ;;  %v585_v16 = vmul.f32 %v1179_v24, %v570_v34  ;;  %v668_v39 = vmul.f32 %v1206_v40, %v664_v27  ;;  %v673_v21 = vmul.f32 %v1206_v40, %v648_v41 }
  0x24   : > { %v746_v5 = vmul.f32 %v1217_v49, %v742_v30  ;;  %v675_v42 = vmul.f32 %v1198_v36, %v660_v47  ;;  %v758_v43 = vmul.f32 %v1221_v51, %v754_v35  ;;  %v763_v29 = vmul.f32 %v1221_v51, %v738_v52 }
  0x25   : > { %v587_v44 = vadd.f32 %v585_v16, %v583_v31  ;;  %v765_v45 = vmul.f32 %v1217_v49, %v750_v57  ;;  %v670_v46 = vsub.f32 %v656_v26, %v668_v39  ;;  %v494_v34 = vmul.f32 %v1192_v32, %v1168_v15 }
  0x26   : > { %v677_v6 = vadd.f32 %v675_v42, %v673_v21  ;;  %v496_v48 = vmul.f32 %v1202_v38, %v1164_v13  ;;  %v760_v50 = vsub.f32 %v746_v5, %v758_v43  ;;  %v584_v53 = vmul.f32 %v1186_v28, %v562_v61 }
  0x27   : > { %v589_v41 = vadd.f32 %v587_v44, %v497_v37  ;;  %v767_v47 = vadd.f32 %v765_v45, %v763_v29  ;;  %v672_v54 = vadd.f32 %v670_v46, %v582_v33  ;;  %v586_v52 = vmul.f32 %v1179_v24, %v574_v2 }
  0x28   : > { %v498_v55 = vadd.f32 %v496_v48, %v494_v34  ;;  %v674_v56 = vmul.f32 %v1206_v40, %v652_v17  ;;  %v676_v58 = vmul.f32 %v1198_v36, %v664_v27  ;;  %v764_v15 = vmul.f32 %v1221_v51, %v742_v30 }
  0x29   : > { %v679_v57 = vadd.f32 %v677_v6, %v589_v41  ;;  %v766_v32 = vmul.f32 %v1217_v49, %v754_v35  ;;  %v762_v13 = vadd.f32 %v760_v50, %v672_v54  ;;  %v588_v38 = vadd.f32 %v586_v52, %v584_v53 }
  0x2a   : > { %v678_v59 = vadd.f32 %v676_v58, %v674_v56 }
  0x2b   : > { %v769_v28 = vadd.f32 %v767_v47, %v679_v57  ;;  %772 = vst [vmem:[%s1241_s13 + $0x4] sm:$0xf] %v762_v13  ;;  %v590_v60 = vadd.f32 %v588_v38, %v498_v55  ;;  %v768_v24 = vadd.f32 %v766_v32, %v764_v15 }
  0x2d   : > { %773 = vst [vmem:[%s414_s16] sm:$0xf] %v769_v28  ;;  %v680_v40 = vadd.f32 %v678_v59, %v590_v60 }
  0x2f   : > { %v770_v61 = vadd.f32 %v768_v24, %v680_v40 }
  0x31   : > { %774 = vst [vmem:[%s414_s16 + $0x4] sm:$0xf] %v770_v61 }
  0x32 PF: > { %s16_s20 = sadd.s32 1, %s1080_s20   ;;  %s1294_s18 = smov %s1076_s19 }
  0x33   : > { %p13_p5 = scmp.ge.s32.totalorder %s16_s20, 6   ;;  %s1295_s19 = smov %s1297_s21 }
  0x35   :  { %15 = sbr.rel (!%p13_p5) target bundleno = 2 (0x2), region = 99 }

// kernel: reverse.1
= control target key start
LH: loop header
LB: loop body
LE: loop exit
PB: predicated region body
PF: predicated region fallthrough
CT: control target
= control target key end

     0   :  { %s1160_s0 = inlined_call_operand.vmem [shape: f32[2,4,2,16,16,3], index: 0, kind: input, shape index: {}]   ;;  %s1161_s1 = inlined_call_operand.vmem [shape: f32[2,4,2,16,16,3], index: 1, kind: output, shape index: {}]  }
   0x1   :  { %v384_v0 = vld [vmem:[%s1160_s0 + $0x20] sm:$0xff]  ;;  %v399_v8 = vld [vmem:[%s1160_s0 + $0x50] sm:$0xff]  ;;  %v478_v48 = vld [vmem:[%s1160_s0 + $0x28] sm:$0xff] }
   0x2   :  { %v385_v1 = vld [vmem:[%s1160_s0 + $0x1a0] sm:$0xff]  ;;  %4 = vst [vmem:[%s1161_s1] sm:$0xff] %v384_v0  ;;  %400 = vst [vmem:[%s1161_s1 + $0x30] sm:$0xff] %v399_v8  ;;  %v401_v9 = vld [vmem:[%s1160_s0 + $0x1d0] sm:$0xff] }
   0x3   :  { %v387_v2 = vld [vmem:[%s1160_s0 + $0x80] sm:$0xff]  ;;  %386 = vst [vmem:[%s1161_s1 + $0x180] sm:$0xff] %v385_v1  ;;  %v403_v10 = vld [vmem:[%s1160_s0 + $0xb0] sm:$0xff]  ;;  %402 = vst [vmem:[%s1161_s1 + $0x1b0] sm:$0xff] %v401_v9 }
   0x4   :  { %388 = vst [vmem:[%s1161_s1 + $0x60] sm:$0xff] %v387_v2  ;;  %v389_v3 = vld [vmem:[%s1160_s0 + $0x200] sm:$0xff]  ;;  %v405_v11 = vld [vmem:[%s1160_s0 + $0x230] sm:$0xff]  ;;  %404 = vst [vmem:[%s1161_s1 + $0x90] sm:$0xff] %v403_v10 }
   0x5   :  { %v391_v4 = vld [vmem:[%s1160_s0 + $0xe0] sm:$0xff]  ;;  %390 = vst [vmem:[%s1161_s1 + $0x1e0] sm:$0xff] %v389_v3  ;;  %406 = vst [vmem:[%s1161_s1 + $0x210] sm:$0xff] %v405_v11  ;;  %v407_v12 = vld [vmem:[%s1160_s0 + $0x110] sm:$0xff] }
   0x6   :  { %v393_v5 = vld [vmem:[%s1160_s0 + $0x260] sm:$0xff]  ;;  %392 = vst [vmem:[%s1161_s1 + $0xc0] sm:$0xff] %v391_v4  ;;  %v409_v13 = vld [vmem:[%s1160_s0 + $0x290] sm:$0xff]  ;;  %408 = vst [vmem:[%s1161_s1 + $0xf0] sm:$0xff] %v407_v12 }
   0x7   :  { %394 = vst [vmem:[%s1161_s1 + $0x240] sm:$0xff] %v393_v5  ;;  %v395_v6 = vld [vmem:[%s1160_s0 + $0x140] sm:$0xff]  ;;  %v411_v14 = vld [vmem:[%s1160_s0 + $0x170] sm:$0xff]  ;;  %410 = vst [vmem:[%s1161_s1 + $0x270] sm:$0xff] %v409_v13 }
   0x8   :  { %v397_v7 = vld [vmem:[%s1160_s0 + $0x2c0] sm:$0xff]  ;;  %396 = vst [vmem:[%s1161_s1 + $0x120] sm:$0xff] %v395_v6  ;;  %412 = vst [vmem:[%s1161_s1 + $0x150] sm:$0xff] %v411_v14  ;;  %v413_v15 = vld [vmem:[%s1160_s0 + $0x2f0] sm:$0xff] }
   0x9   :  { %398 = vst [vmem:[%s1161_s1 + $0x2a0] sm:$0xff] %v397_v7  ;;  %v415_v16 = vld [vmem:[%s1160_s0 + $0x10] sm:$0xff]  ;;  %414 = vst [vmem:[%s1161_s1 + $0x2d0] sm:$0xff] %v413_v15  ;;  %v431_v24 = vld [vmem:[%s1160_s0 + $0x40] sm:$0xff] }
   0xa   :  { %v417_v17 = vld [vmem:[%s1160_s0 + $0x190] sm:$0xff]  ;;  %416 = vst [vmem:[%s1161_s1 + $0x10] sm:$0xff] %v415_v16  ;;  %v433_v25 = vld [vmem:[%s1160_s0 + $0x1c0] sm:$0xff]  ;;  %432 = vst [vmem:[%s1161_s1 + $0x40] sm:$0xff] %v431_v24 }
   0xb   :  { %418 = vst [vmem:[%s1161_s1 + $0x190] sm:$0xff] %v417_v17  ;;  %v419_v18 = vld [vmem:[%s1160_s0 + $0x70] sm:$0xff]  ;;  %v435_v26 = vld [vmem:[%s1160_s0 + $0xa0] sm:$0xff]  ;;  %434 = vst [vmem:[%s1161_s1 + $0x1c0] sm:$0xff] %v433_v25 }
   0xc   :  { %v421_v19 = vld [vmem:[%s1160_s0 + $0x1f0] sm:$0xff]  ;;  %420 = vst [vmem:[%s1161_s1 + $0x70] sm:$0xff] %v419_v18  ;;  %436 = vst [vmem:[%s1161_s1 + $0xa0] sm:$0xff] %v435_v26  ;;  %v437_v27 = vld [vmem:[%s1160_s0 + $0x220] sm:$0xff] }
   0xd   :  { %v423_v20 = vld [vmem:[%s1160_s0 + $0xd0] sm:$0xff]  ;;  %422 = vst [vmem:[%s1161_s1 + $0x1f0] sm:$0xff] %v421_v19  ;;  %v439_v28 = vld [vmem:[%s1160_s0 + $0x100] sm:$0xff]  ;;  %438 = vst [vmem:[%s1161_s1 + $0x220] sm:$0xff] %v437_v27 }
   0xe   :  { %424 = vst [vmem:[%s1161_s1 + $0xd0] sm:$0xff] %v423_v20  ;;  %v425_v21 = vld [vmem:[%s1160_s0 + $0x250] sm:$0xff]  ;;  %v441_v29 = vld [vmem:[%s1160_s0 + $0x280] sm:$0xff]  ;;  %440 = vst [vmem:[%s1161_s1 + $0x100] sm:$0xff] %v439_v28 }
   0xf   :  { %v427_v22 = vld [vmem:[%s1160_s0 + $0x130] sm:$0xff]  ;;  %426 = vst [vmem:[%s1161_s1 + $0x250] sm:$0xff] %v425_v21  ;;  %442 = vst [vmem:[%s1161_s1 + $0x280] sm:$0xff] %v441_v29  ;;  %v443_v30 = vld [vmem:[%s1160_s0 + $0x160] sm:$0xff] }
  0x10   :  { %v429_v23 = vld [vmem:[%s1160_s0 + $0x2b0] sm:$0xff]  ;;  %428 = vst [vmem:[%s1161_s1 + $0x130] sm:$0xff] %v427_v22  ;;  %v445_v31 = vld [vmem:[%s1160_s0 + $0x2e0] sm:$0xff]  ;;  %444 = vst [vmem:[%s1161_s1 + $0x160] sm:$0xff] %v443_v30 }
  0x11   :  { %430 = vst [vmem:[%s1161_s1 + $0x2b0] sm:$0xff] %v429_v23  ;;  %v129_v32 = vld [vmem:[%s1160_s0] sm:$0xff]  ;;  %446 = vst [vmem:[%s1161_s1 + $0x2e0] sm:$0xff] %v445_v31  ;;  %v462_v40 = vld [vmem:[%s1160_s0 + $0x30] sm:$0xff] }
  0x12   :  { %447 = vst [vmem:[%s1161_s1 + $0x20] sm:$0xff] %v129_v32  ;;  %v448_v33 = vld [vmem:[%s1160_s0 + $0x180] sm:$0xff]  ;;  %v464_v41 = vld [vmem:[%s1160_s0 + $0x1b0] sm:$0xff]  ;;  %463 = vst [vmem:[%s1161_s1 + $0x50] sm:$0xff] %v462_v40 }
  0x13   :  { %v450_v34 = vld [vmem:[%s1160_s0 + $0x60] sm:$0xff]  ;;  %449 = vst [vmem:[%s1161_s1 + $0x1a0] sm:$0xff] %v448_v33  ;;  %465 = vst [vmem:[%s1161_s1 + $0x1d0] sm:$0xff] %v464_v41  ;;  %v466_v42 = vld [vmem:[%s1160_s0 + $0x90] sm:$0xff] }
  0x14   :  { %v452_v35 = vld [vmem:[%s1160_s0 + $0x1e0] sm:$0xff]  ;;  %451 = vst [vmem:[%s1161_s1 + $0x80] sm:$0xff] %v450_v34  ;;  %v468_v43 = vld [vmem:[%s1160_s0 + $0x210] sm:$0xff]  ;;  %467 = vst [vmem:[%s1161_s1 + $0xb0] sm:$0xff] %v466_v42 }
  0x15   :  { %453 = vst [vmem:[%s1161_s1 + $0x200] sm:$0xff] %v452_v35  ;;  %v454_v36 = vld [vmem:[%s1160_s0 + $0xc0] sm:$0xff]  ;;  %v470_v44 = vld [vmem:[%s1160_s0 + $0xf0] sm:$0xff]  ;;  %469 = vst [vmem:[%s1161_s1 + $0x230] sm:$0xff] %v468_v43 }
  0x16   :  { %v456_v37 = vld [vmem:[%s1160_s0 + $0x240] sm:$0xff]  ;;  %455 = vst [vmem:[%s1161_s1 + $0xe0] sm:$0xff] %v454_v36  ;;  %471 = vst [vmem:[%s1161_s1 + $0x110] sm:$0xff] %v470_v44  ;;  %v472_v45 = vld [vmem:[%s1160_s0 + $0x270] sm:$0xff] }
  0x17   :  { %v458_v38 = vld [vmem:[%s1160_s0 + $0x120] sm:$0xff]  ;;  %457 = vst [vmem:[%s1161_s1 + $0x260] sm:$0xff] %v456_v37  ;;  %v474_v46 = vld [vmem:[%s1160_s0 + $0x150] sm:$0xff]  ;;  %473 = vst [vmem:[%s1161_s1 + $0x290] sm:$0xff] %v472_v45 }
  0x18   :  { %459 = vst [vmem:[%s1161_s1 + $0x140] sm:$0xff] %v458_v38  ;;  %v460_v39 = vld [vmem:[%s1160_s0 + $0x2a0] sm:$0xff]  ;;  %v476_v47 = vld [vmem:[%s1160_s0 + $0x2d0] sm:$0xff]  ;;  %475 = vst [vmem:[%s1161_s1 + $0x170] sm:$0xff] %v474_v46 }
  0x19   :  { %461 = vst [vmem:[%s1161_s1 + $0x2c0] sm:$0xff] %v460_v39  ;;  %477 = vst [vmem:[%s1161_s1 + $0x2f0] sm:$0xff] %v476_v47  ;;  %v480_v49 = vld [vmem:[%s1160_s0 + $0x1a8] sm:$0xff]  ;;  %v494_v56 = vld [vmem:[%s1160_s0 + $0x58] sm:$0xff] }
  0x1a   :  { %v482_v50 = vld [vmem:[%s1160_s0 + $0x88] sm:$0xff]  ;;  %479 = vst [vmem:[%s1161_s1 + $0x8] sm:$0xff] %v478_v48  ;;  %481 = vst [vmem:[%s1161_s1 + $0x188] sm:$0xff] %v480_v49  ;;  %v496_v57 = vld [vmem:[%s1160_s0 + $0x1d8] sm:$0xff] }
  0x1b   :  { %483 = vst [vmem:[%s1161_s1 + $0x68] sm:$0xff] %v482_v50  ;;  %v484_v51 = vld [vmem:[%s1160_s0 + $0x208] sm:$0xff]  ;;  %495 = vst [vmem:[%s1161_s1 + $0x38] sm:$0xff] %v494_v56  ;;  %v498_v58 = vld [vmem:[%s1160_s0 + $0xb8] sm:$0xff] }
  0x1c   :  { %v486_v52 = vld [vmem:[%s1160_s0 + $0xe8] sm:$0xff]  ;;  %485 = vst [vmem:[%s1161_s1 + $0x1e8] sm:$0xff] %v484_v51  ;;  %v500_v59 = vld [vmem:[%s1160_s0 + $0x238] sm:$0xff]  ;;  %497 = vst [vmem:[%s1161_s1 + $0x1b8] sm:$0xff] %v496_v57 }
  0x1d   :  { %v488_v53 = vld [vmem:[%s1160_s0 + $0x268] sm:$0xff]  ;;  %487 = vst [vmem:[%s1161_s1 + $0xc8] sm:$0xff] %v486_v52  ;;  %499 = vst [vmem:[%s1161_s1 + $0x98] sm:$0xff] %v498_v58  ;;  %v502_v60 = vld [vmem:[%s1160_s0 + $0x118] sm:$0xff] }
  0x1e   :  { %489 = vst [vmem:[%s1161_s1 + $0x248] sm:$0xff] %v488_v53  ;;  %v490_v54 = vld [vmem:[%s1160_s0 + $0x148] sm:$0xff]  ;;  %501 = vst [vmem:[%s1161_s1 + $0x218] sm:$0xff] %v500_v59  ;;  %v504_v61 = vld [vmem:[%s1160_s0 + $0x298] sm:$0xff] }
  0x1f   :  { %v492_v55 = vld [vmem:[%s1160_s0 + $0x2c8] sm:$0xff]  ;;  %491 = vst [vmem:[%s1161_s1 + $0x128] sm:$0xff] %v490_v54  ;;  %v506_v62 = vld [vmem:[%s1160_s0 + $0x178] sm:$0xff]  ;;  %503 = vst [vmem:[%s1161_s1 + $0xf8] sm:$0xff] %v502_v60 }
  0x20   :  { %493 = vst [vmem:[%s1161_s1 + $0x2a8] sm:$0xff] %v492_v55  ;;  %505 = vst [vmem:[%s1161_s1 + $0x278] sm:$0xff] %v504_v61  ;;  %v508_v63 = vld [vmem:[%s1160_s0 + $0x2f8] sm:$0xff]  ;;  %v526_v8 = vld [vmem:[%s1160_s0 + $0x48] sm:$0xff] }
  0x21   :  { %507 = vst [vmem:[%s1161_s1 + $0x158] sm:$0xff] %v506_v62  ;;  %v510_v0 = vld [vmem:[%s1160_s0 + $0x18] sm:$0xff]  ;;  %509 = vst [vmem:[%s1161_s1 + $0x2d8] sm:$0xff] %v508_v63  ;;  %v528_v9 = vld [vmem:[%s1160_s0 + $0x1c8] sm:$0xff] }
  0x22   :  { %v512_v1 = vld [vmem:[%s1160_s0 + $0x198] sm:$0xff]  ;;  %511 = vst [vmem:[%s1161_s1 + $0x18] sm:$0xff] %v510_v0  ;;  %v530_v10 = vld [vmem:[%s1160_s0 + $0xa8] sm:$0xff]  ;;  %527 = vst [vmem:[%s1161_s1 + $0x48] sm:$0xff] %v526_v8 }
  0x23   :  { %513 = vst [vmem:[%s1161_s1 + $0x198] sm:$0xff] %v512_v1  ;;  %v514_v2 = vld [vmem:[%s1160_s0 + $0x78] sm:$0xff]  ;;  %529 = vst [vmem:[%s1161_s1 + $0x1c8] sm:$0xff] %v528_v9  ;;  %v532_v11 = vld [vmem:[%s1160_s0 + $0x228] sm:$0xff] }
  0x24   :  { %v516_v3 = vld [vmem:[%s1160_s0 + $0x1f8] sm:$0xff]  ;;  %515 = vst [vmem:[%s1161_s1 + $0x78] sm:$0xff] %v514_v2  ;;  %531 = vst [vmem:[%s1161_s1 + $0xa8] sm:$0xff] %v530_v10  ;;  %v534_v12 = vld [vmem:[%s1160_s0 + $0x108] sm:$0xff] }
  0x25   :  { %v518_v4 = vld [vmem:[%s1160_s0 + $0xd8] sm:$0xff]  ;;  %517 = vst [vmem:[%s1161_s1 + $0x1f8] sm:$0xff] %v516_v3  ;;  %v536_v13 = vld [vmem:[%s1160_s0 + $0x288] sm:$0xff]  ;;  %533 = vst [vmem:[%s1161_s1 + $0x228] sm:$0xff] %v532_v11 }
  0x26   :  { %519 = vst [vmem:[%s1161_s1 + $0xd8] sm:$0xff] %v518_v4  ;;  %v520_v5 = vld [vmem:[%s1160_s0 + $0x258] sm:$0xff]  ;;  %535 = vst [vmem:[%s1161_s1 + $0x108] sm:$0xff] %v534_v12  ;;  %v538_v14 = vld [vmem:[%s1160_s0 + $0x168] sm:$0xff] }
  0x27   :  { %v522_v6 = vld [vmem:[%s1160_s0 + $0x138] sm:$0xff]  ;;  %521 = vst [vmem:[%s1161_s1 + $0x258] sm:$0xff] %v520_v5  ;;  %537 = vst [vmem:[%s1161_s1 + $0x288] sm:$0xff] %v536_v13  ;;  %v540_v15 = vld [vmem:[%s1160_s0 + $0x2e8] sm:$0xff] }
  0x28   :  { %v524_v7 = vld [vmem:[%s1160_s0 + $0x2b8] sm:$0xff]  ;;  %523 = vst [vmem:[%s1161_s1 + $0x138] sm:$0xff] %v522_v6  ;;  %v542_v16 = vld [vmem:[%s1160_s0 + $0x8] sm:$0xff]  ;;  %539 = vst [vmem:[%s1161_s1 + $0x168] sm:$0xff] %v538_v14 }
  0x29   :  { %525 = vst [vmem:[%s1161_s1 + $0x2b8] sm:$0xff] %v524_v7  ;;  %541 = vst [vmem:[%s1161_s1 + $0x2e8] sm:$0xff] %v540_v15  ;;  %v544_v17 = vld [vmem:[%s1160_s0 + $0x188] sm:$0xff]  ;;  %v558_v24 = vld [vmem:[%s1160_s0 + $0x38] sm:$0xff] }
  0x2a   :  { %543 = vst [vmem:[%s1161_s1 + $0x28] sm:$0xff] %v542_v16  ;;  %v546_v18 = vld [vmem:[%s1160_s0 + $0x68] sm:$0xff]  ;;  %545 = vst [vmem:[%s1161_s1 + $0x1a8] sm:$0xff] %v544_v17  ;;  %v560_v25 = vld [vmem:[%s1160_s0 + $0x1b8] sm:$0xff] }
  0x2b   :  { %v548_v19 = vld [vmem:[%s1160_s0 + $0x1e8] sm:$0xff]  ;;  %547 = vst [vmem:[%s1161_s1 + $0x88] sm:$0xff] %v546_v18  ;;  %559 = vst [vmem:[%s1161_s1 + $0x58] sm:$0xff] %v558_v24  ;;  %v562_v26 = vld [vmem:[%s1160_s0 + $0x98] sm:$0xff] }
  0x2c   :  { %549 = vst [vmem:[%s1161_s1 + $0x208] sm:$0xff] %v548_v19  ;;  %v550_v20 = vld [vmem:[%s1160_s0 + $0xc8] sm:$0xff]  ;;  %561 = vst [vmem:[%s1161_s1 + $0x1d8] sm:$0xff] %v560_v25  ;;  %v564_v27 = vld [vmem:[%s1160_s0 + $0x218] sm:$0xff] }
  0x2d   :  { %v552_v21 = vld [vmem:[%s1160_s0 + $0x248] sm:$0xff]  ;;  %551 = vst [vmem:[%s1161_s1 + $0xe8] sm:$0xff] %v550_v20  ;;  %v566_v28 = vld [vmem:[%s1160_s0 + $0xf8] sm:$0xff]  ;;  %563 = vst [vmem:[%s1161_s1 + $0xb8] sm:$0xff] %v562_v26 }
  0x2e   :  { %v554_v22 = vld [vmem:[%s1160_s0 + $0x128] sm:$0xff]  ;;  %553 = vst [vmem:[%s1161_s1 + $0x268] sm:$0xff] %v552_v21  ;;  %565 = vst [vmem:[%s1161_s1 + $0x238] sm:$0xff] %v564_v27  ;;  %v568_v29 = vld [vmem:[%s1160_s0 + $0x278] sm:$0xff] }
  0x2f   :  { %555 = vst [vmem:[%s1161_s1 + $0x148] sm:$0xff] %v554_v22  ;;  %v556_v23 = vld [vmem:[%s1160_s0 + $0x2a8] sm:$0xff]  ;;  %567 = vst [vmem:[%s1161_s1 + $0x118] sm:$0xff] %v566_v28  ;;  %v570_v30 = vld [vmem:[%s1160_s0 + $0x158] sm:$0xff] }
  0x30   :  { %557 = vst [vmem:[%s1161_s1 + $0x2c8] sm:$0xff] %v556_v23  ;;  %v572_v31 = vld [vmem:[%s1160_s0 + $0x2d8] sm:$0xff]  ;;  %569 = vst [vmem:[%s1161_s1 + $0x298] sm:$0xff] %v568_v29 }
  0x31   :  { %571 = vst [vmem:[%s1161_s1 + $0x178] sm:$0xff] %v570_v30  ;;  %573 = vst [vmem:[%s1161_s1 + $0x2f8] sm:$0xff] %v572_v31 }

</bundles_post_ra>
